<compile_context>
chip_gen: v6e
topology: v6e:2x2x1
jax: 0.10.0
libtpu: 0.0.40
codegen_flags: <defaults>
</compile_context>

<pallas_src>
import functools
import math

import jax
import jax.numpy as jnp
from jax import lax
from jax.experimental import pallas as pl
from jax.experimental.pallas import tpu as pltpu


def _bay_loss_kernel(st_ref, cood_ref, pts_ref, pred_ref, out_ref, pc_sc, bg_sc,
                     *, sigma, dsr, bg_ratio, rows_per_tile):
    # Block shapes:
    #   st_ref   : (B,)           scalar-prefetch (SMEM) st_sizes
    #   cood_ref : (2, RC)        pre-scaled cell coords: row 0 = x, row 1 = y (tile 0)
    #   pts_ref  : (1, N, 3)      cols: 0 = x * s, 1 = y * s, 2 = target
    #   pred_ref : (1, 1, 1, RC)  one flattened row-tile of the predicted density map
    #   out_ref  : (1, 1, 1)      per-image loss (written on the last row tile)
    #   pc_sc    : (N, 1)         per-point pre_count accumulator (VMEM scratch)
    #   bg_sc    : (1, 1)         background pre_count accumulator (VMEM scratch)
    b = pl.program_id(0)
    t = pl.program_id(1)
    s = 1.0 / (math.sqrt(2.0) * sigma)           # q = dis / (2*sigma^2) scaling

    @pl.when(t == 0)
    def _init():
        pc_sc[...] = jnp.zeros_like(pc_sc)
        bg_sc[...] = jnp.zeros_like(bg_sc)

    xs = pts_ref[0, :, 0:1]                      # (N, 1)  pre-scaled point x
    ys = pts_ref[0, :, 1:2]                      # (N, 1)  pre-scaled point y
    cx = cood_ref[0:1, :]                        # (1, RC) pre-scaled cell x
    y_off = (t * rows_per_tile).astype(jnp.float32) * (dsr * s)
    cy = cood_ref[1:2, :] + y_off                # (1, RC) pre-scaled cell y (this tile)

    # q[n, f] = dis(point n, cell f) / (2*sigma^2); lane-dense over the RC cells.
    dx = xs - cx                                 # (N, RC)
    dy = ys - cy                                 # (N, RC)
    q = dx * dx + dy * dy                        # (N, RC)

    # Background row: exact min distance recovered from the per-cell min of q.
    min_q = jnp.maximum(jnp.min(q, axis=0, keepdims=True), 0.0)        # (1, RC)
    st_b = st_ref[b]                                                   # SMEM scalar
    bg_d = st_b * bg_ratio - jnp.sqrt(min_q) * (math.sqrt(2.0) * sigma)
    bgs = bg_d * s
    bg_q = bgs * bgs                                                   # (1, RC)

    # Softmax over the N points + background row (stabilizer = min of all q).
    m = jnp.minimum(min_q, bg_q)                 # (1, RC)
    e = jnp.exp(m - q)                           # (N, RC)
    ebg = jnp.exp(m - bg_q)                      # (1, RC)
    denom = jnp.sum(e, axis=0, keepdims=True) + ebg                    # (1, RC)

    r_cell = pred_ref[0, 0] / denom              # (1, RC)  exact divide

    # pre_count contributions: MXU matvec; no g = e * r_cell slab is materialized.
    pc_tile = lax.dot_general(
        e, r_cell,
        dimension_numbers=(((1,), (1,)), ((), ())),
        precision=lax.Precision.HIGHEST,
        preferred_element_type=jnp.float32)      # (N, 1)
    bg_tile = jnp.sum(ebg * r_cell, axis=1, keepdims=True)             # (1, 1)

    pc_sc[...] += pc_tile
    bg_sc[...] += bg_tile

    @pl.when(t == pl.num_programs(1) - 1)
    def _finalize():
        tgt = pts_ref[0, :, 2:3]                                       # (N, 1)
        loss_pts = jnp.sum(jnp.abs(tgt - pc_sc[...]), axis=0, keepdims=True)
        out_ref[0] = loss_pts + jnp.abs(bg_sc[...])


def _vmem_limit_bytes():
    cap = 64 * 1024 * 1024
    try:
        info = pltpu.get_tpu_info()
        cap = int(getattr(info, "vmem_capacity_bytes", cap) or cap)
    except Exception:
        pass
    # ~48 MiB on 64-MiB v7x parts, up to 96 MiB on 128-MiB v5e/v6e parts.
    return int(min(cap * 3 // 4, 96 * 1024 * 1024))


def _pick_rows_per_tile(H, W, N, vmem_limit_bytes):
    """Largest divisor R of H whose (N, R*W) f32 working set fits the VMEM budget,
    preferring tiles whose lane extent R*W is a multiple of 128."""
    live_slabs = 3                                  # q, e, + dot/exp temporaries
    budget = max(vmem_limit_bytes // 2, 4 * 1024 * 1024)   # leave room for pipelining
    cap_cells = budget // (4 * live_slabs * max(N, 1))      # max R*W cells per slab
    best, best_aligned = 1, None
    for r in range(1, H + 1):
        if H % r:
            continue
        if r * W <= cap_cells:
            best = r
            if (r * W) % 128 == 0:
                best_aligned = r
    return best_aligned if best_aligned is not None else best


def supernet_loss(pred, points, target, st_sizes, *, sigma, crop_size,
                  downsample_ratio, background_ratio, rows_per_tile=None):
    B, ch, H, W = pred.shape
    C = crop_size // downsample_ratio
    assert ch == 1 and H == C and W == C, \
        "pred spatial size must be crop_size // downsample_ratio"
    N = points.shape[1]
    dsr = float(downsample_ratio)
    s = 1.0 / (math.sqrt(2.0) * float(sigma))

    vmem_limit = _vmem_limit_bytes()
    if rows_per_tile is None:
        rows_per_tile = _pick_rows_per_tile(H, W, N, vmem_limit)
    assert H % rows_per_tile == 0, "rows_per_tile must divide the map height"
    # TODO(synk): add a masked last tile so awkward (e.g. prime) H need not fall to R=1.
    T = H // rows_per_tile
    RC = rows_per_tile * W

    # Pack (pre-scaled) x, y and the target into one (B, N, 3) input.
    pts = jnp.concatenate(
        [points.astype(jnp.float32) * s,
         target.astype(jnp.float32)[..., None]], axis=-1)              # (B, N, 3)
    # Flatten each row tile of the density map onto the lane axis.
    pred_r = pred.astype(jnp.float32).reshape(B, T, 1, RC)
    st = st_sizes.astype(jnp.float32).reshape(B)
    # Pre-scaled per-cell centre coordinates for tile 0 (y offset added in-kernel).
    cols = (jnp.arange(W, dtype=jnp.float32) * dsr + dsr / 2.0) * s
    rows0 = (jnp.arange(rows_per_tile, dtype=jnp.float32) * dsr + dsr / 2.0) * s
    cood = jnp.stack([jnp.tile(cols, rows_per_tile),
                      jnp.repeat(rows0, W)], axis=0)                    # (2, RC)

    kernel = functools.partial(_bay_loss_kernel, sigma=float(sigma), dsr=dsr,
                               bg_ratio=float(background_ratio),
                               rows_per_tile=rows_per_tile)

    per_image = pl.pallas_call(
        kernel,
        out_shape=jax.ShapeDtypeStruct((B, 1, 1), jnp.float32),
        grid_spec=pltpu.PrefetchScalarGridSpec(
            num_scalar_prefetch=1,                 # st_sizes -> SMEM
            grid=(B, T),
            in_specs=[
                pl.BlockSpec((2, RC), lambda b, t, st: (0, 0)),              # cood
                pl.BlockSpec((1, N, 3), lambda b, t, st: (b, 0, 0)),         # pts
                pl.BlockSpec((1, 1, 1, RC), lambda b, t, st: (b, t, 0, 0)),  # pred tile
            ],
            out_specs=pl.BlockSpec((1, 1, 1), lambda b, t, st: (b, 0, 0)),
            scratch_shapes=[
                pltpu.VMEM((N, 1), jnp.float32),   # per-point pre_count accumulator
                pltpu.VMEM((1, 1), jnp.float32),   # background pre_count accumulator
            ],
        ),
        compiler_params=pltpu.CompilerParams(
            dimension_semantics=("parallel", "arbitrary"),
            vmem_limit_bytes=vmem_limit),
    )(st, cood, pts, pred_r)

    return jnp.mean(per_image)          # == sum / len(prob_list)


def _reference_loss(pred, points, target, st_sizes, *, sigma, crop_size,
                    downsample_ratio, background_ratio):
    """Pure-JAX re-implementation of Post_Prob + Bay_Loss for verification."""
    B, _, H, W = pred.shape
    cood = (jnp.arange(0, crop_size, downsample_ratio, dtype=jnp.float32)
            + downsample_ratio / 2.0)
    total = 0.0
    for b in range(B):
        x = points[b, :, 0:1]
        y = points[b, :, 1:2]
        x_dis = (x - cood[None, :]) ** 2                    # (N, C)
        y_dis = (y - cood[None, :]) ** 2                    # (N, C)
        dis = (y_dis[:, :, None] + x_dis[:, None, :]).reshape(points.shape[1], -1)
        min_dis = jnp.clip(jnp.min(dis, axis=0, keepdims=True), 0.0)
        d = st_sizes[b] * background_ratio
        bg_dis = (d - jnp.sqrt(min_dis)) ** 2
        dis_full = jnp.concatenate([dis, bg_dis], axis=0)
        prob = jax.nn.softmax(-dis_full / (2.0 * sigma ** 2), axis=0)
        tgt_full = jnp.concatenate(
            [target[b].astype(jnp.float32), jnp.zeros((1,), jnp.float32)])
        pre_count = jnp.sum(pred[b].reshape(1, -1) * prob, axis=1)
        total = total + jnp.sum(jnp.abs(tgt_full - pre_count))
    return total / B


if __name__ == "__main__":
    key = jax.random.PRNGKey(0)
    B, N = 2, 8
    sigma = 8.0
    crop_size = 64
    downsample_ratio = 4
    background_ratio = 1.0
    C = crop_size // downsample_ratio       # 16 -> pred is (2, 1, 16, 16)

    k1, k2, k3 = jax.random.split(key, 3)
    pred = jax.random.uniform(k1, (B, 1, C, C), dtype=jnp.float32)
    points = jax.random.uniform(k2, (B, N, 2), dtype=jnp.float32) * crop_size
    target = jax.random.uniform(k3, (B, N), dtype=jnp.float32) * 2.0
    st_sizes = jnp.full((B,), float(crop_size), dtype=jnp.float32)

    # rows_per_tile=8 -> 2 row tiles per image: exercises the init / accumulate /
    # finalize path of the tiled reduction (the auto-picker would pick one tile here).
    loss = supernet_loss(pred, points, target, st_sizes, sigma=sigma,
                         crop_size=crop_size,
                         downsample_ratio=downsample_ratio,
                         background_ratio=background_ratio,
                         rows_per_tile=8)
    jax.block_until_ready(loss)

    ref = _reference_loss(pred, points, target, st_sizes, sigma=sigma,
                          crop_size=crop_size,
                          downsample_ratio=downsample_ratio,
                          background_ratio=background_ratio)
    assert jnp.allclose(loss, ref, rtol=5e-3, atol=5e-3), (loss, ref)
    print("KERNEL_OK")
</pallas_src>

<mosaic_0001>
module attributes {stable_mosaic.version = 11 : i64} {
  func.func @_bay_loss_kernel(%arg0: i32, %arg1: i32, %arg2: memref<2xf32, #tpu.memory_space<smem>>, %arg3: memref<2x128xf32, #tpu.memory_space<vmem>>, %arg4: memref<1x8x3xf32, #tpu.memory_space<vmem>>, %arg5: memref<1x1x1x128xf32, #tpu.memory_space<vmem>>, %arg6: memref<1x1x1xf32, #tpu.memory_space<vmem>>, %arg7: memref<8x1xf32, #tpu.memory_space<vmem>>, %arg8: memref<1x1xf32, #tpu.memory_space<vmem>>) attributes {dimension_semantics = [#tpu.dimension_semantics<parallel>, #tpu.dimension_semantics<arbitrary>], iteration_bounds = array<i64: 2, 2>, scalar_prefetch = 1 : i64, scratch_operands = 2 : i64, tpu.core_type = #tpu.core_type<tc>, window_params = [{pipeline_mode = #tpu.pipeline_mode<synchronous>, transform_indices = @transform_0, window_bounds = array<i64: 2, 128>}, {transform_indices = @transform_1, window_bounds = array<i64: 1, 8, 3>}, {transform_indices = @transform_2, window_bounds = array<i64: 1, 1, 1, 128>}, {transform_indices = @transform_3, window_bounds = array<i64: 1, 1, 1>}]} {
    %c0_i32 = arith.constant 0 : i32
    %0 = arith.cmpi eq, %arg1, %c0_i32 : i32
    %1 = arith.extui %0 : i1 to i32
    %c0_i32_0 = arith.constant 0 : i32
    %2 = arith.cmpi ne, %1, %c0_i32_0 : i32
    scf.if %2 {
      %cst_30 = arith.constant 0.000000e+00 : f32
      %63 = vector.broadcast %cst_30 : f32 to vector<8x1xf32>
      %c0_31 = arith.constant 0 : index
      %c0_32 = arith.constant 0 : index
      %64 = vector.load %arg7[%c0_31, %c0_32] : memref<8x1xf32, #tpu.memory_space<vmem>>, vector<8x1xf32>
      tpu.vector_store %arg7[%c0_31, %c0_32], %63 {strides = array<i32>} : memref<8x1xf32, #tpu.memory_space<vmem>>, vector<8x1xf32>,
      %cst_33 = arith.constant 0.000000e+00 : f32
      %65 = vector.broadcast %cst_33 : f32 to vector<1x1xf32>
      %c0_34 = arith.constant 0 : index
      %c0_35 = arith.constant 0 : index
      %66 = vector.load %arg8[%c0_34, %c0_35] : memref<1x1xf32, #tpu.memory_space<vmem>>, vector<1x1xf32>
      tpu.vector_store %arg8[%c0_34, %c0_35], %65 {strides = array<i32>} : memref<1x1xf32, #tpu.memory_space<vmem>>, vector<1x1xf32>,
    } else {
    }
    %c0 = arith.constant 0 : index
    %c0_1 = arith.constant 0 : index
    %c0_2 = arith.constant 0 : index
    %3 = vector.load %arg4[%c0, %c0_1, %c0_2] : memref<1x8x3xf32, #tpu.memory_space<vmem>>, vector<1x8x1xf32>
    %4 = vector.shape_cast %3 : vector<1x8x1xf32> to vector<8x1xf32>
    %c0_3 = arith.constant 0 : index
    %c0_4 = arith.constant 0 : index
    %c1 = arith.constant 1 : index
    %5 = vector.load %arg4[%c0_3, %c0_4, %c1] : memref<1x8x3xf32, #tpu.memory_space<vmem>>, vector<1x8x1xf32>
    %6 = vector.shape_cast %5 : vector<1x8x1xf32> to vector<8x1xf32>
    %c0_5 = arith.constant 0 : index
    %c0_6 = arith.constant 0 : index
    %7 = vector.load %arg3[%c0_5, %c0_6] : memref<2x128xf32, #tpu.memory_space<vmem>>, vector<1x128xf32>
    %c8_i32 = arith.constant 8 : i32
    %8 = arith.muli %arg1, %c8_i32 : i32
    %9 = arith.sitofp %8 : i32 to f32
    %cst = arith.constant 0.353553385 : f32
    %10 = arith.mulf %9, %cst : f32
    %c1_7 = arith.constant 1 : index
    %c0_8 = arith.constant 0 : index
    %11 = vector.load %arg3[%c1_7, %c0_8] : memref<2x128xf32, #tpu.memory_space<vmem>>, vector<1x128xf32>
    %12 = vector.broadcast %10 : f32 to vector<1x128xf32>
    %13 = arith.addf %11, %12 : vector<1x128xf32>
    %14 = vector.broadcast %4 : vector<8x1xf32> to vector<8x128xf32>
    %15 = vector.broadcast %7 : vector<1x128xf32> to vector<8x128xf32>
    %16 = arith.subf %14, %15 : vector<8x128xf32>
    %17 = vector.broadcast %6 : vector<8x1xf32> to vector<8x128xf32>
    %18 = vector.broadcast %13 : vector<1x128xf32> to vector<8x128xf32>
    %19 = arith.subf %17, %18 : vector<8x128xf32>
    %20 = arith.mulf %16, %16 : vector<8x128xf32>
    %21 = arith.mulf %19, %19 : vector<8x128xf32>
    %22 = arith.addf %20, %21 : vector<8x128xf32>
    %cst_9 = arith.constant dense<0x7F800000> : vector<128xf32>
    %23 = vector.multi_reduction <minimumf>, %22, %cst_9 [0] : vector<8x128xf32> to vector<128xf32>
    %24 = vector.shape_cast %23 : vector<128xf32> to vector<1x128xf32>
    %cst_10 = arith.constant 0.000000e+00 : f32
    %25 = vector.broadcast %cst_10 : f32 to vector<1x128xf32>
    %26 = arith.maximumf %24, %25 : vector<1x128xf32>
    %27 = arith.index_cast %arg0 : i32 to index
    %28 = memref.load %arg2[%27] : memref<2xf32, #tpu.memory_space<smem>>
    %cst_11 = arith.constant 1.000000e+00 : f32
    %29 = arith.mulf %28, %cst_11 : f32
    %30 = math.sqrt %26 : vector<1x128xf32>
    %cst_12 = arith.constant 11.3137083 : f32
    %31 = vector.broadcast %cst_12 : f32 to vector<1x128xf32>
    %32 = arith.mulf %30, %31 : vector<1x128xf32>
    %33 = vector.broadcast %29 : f32 to vector<1x128xf32>
    %34 = arith.subf %33, %32 : vector<1x128xf32>
    %cst_13 = arith.constant 0.0883883461 : f32
    %35 = vector.broadcast %cst_13 : f32 to vector<1x128xf32>
    %36 = arith.mulf %34, %35 : vector<1x128xf32>
    %37 = arith.mulf %36, %36 : vector<1x128xf32>
    %38 = arith.minimumf %26, %37 : vector<1x128xf32>
    %39 = vector.broadcast %38 : vector<1x128xf32> to vector<8x128xf32>
    %40 = arith.subf %39, %22 : vector<8x128xf32>
    %41 = math.exp %40 : vector<8x128xf32>
    %42 = arith.subf %38, %37 : vector<1x128xf32>
    %43 = math.exp %42 : vector<1x128xf32>
    %cst_14 = arith.constant dense<0.000000e+00> : vector<128xf32>
    %44 = vector.multi_reduction <add>, %41, %cst_14 [0] : vector<8x128xf32> to vector<128xf32>
    %45 = vector.shape_cast %44 : vector<128xf32> to vector<1x128xf32>
    %46 = arith.addf %45, %43 : vector<1x128xf32>
    %c0_15 = arith.constant 0 : index
    %c0_16 = arith.constant 0 : index
    %c0_17 = arith.constant 0 : index
    %c0_18 = arith.constant 0 : index
    %47 = vector.load %arg5[%c0_15, %c0_16, %c0_17, %c0_18] : memref<1x1x1x128xf32, #tpu.memory_space<vmem>>, vector<1x1x1x128xf32>
    %48 = vector.shape_cast %47 : vector<1x1x1x128xf32> to vector<1x128xf32>
    %49 = arith.divf %48, %46 : vector<1x128xf32>
    %cst_19 = arith.constant dense<0.000000e+00> : vector<8x1xf32>
    %50 = tpu.matmul %41, %49, %cst_19 {dimension_numbers = #tpu.dot_dimension_numbers<[1], [1], [0], [0], [0, 0, 1, 0], [], []>, precision = #tpu.contract_precision<fp32>} : vector<8x128xf32>, vector<1x128xf32>, vector<8x1xf32> -> vector<8x1xf32>
    %51 = arith.mulf %43, %49 : vector<1x128xf32>
    %cst_20 = arith.constant dense<0.000000e+00> : vector<1xf32>
    %52 = vector.multi_reduction <add>, %51, %cst_20 [1] : vector<1x128xf32> to vector<1xf32>
    %53 = vector.shape_cast %52 : vector<1xf32> to vector<1x1xf32>
    %c0_21 = arith.constant 0 : index
    %c0_22 = arith.constant 0 : index
    %54 = vector.load %arg7[%c0_21, %c0_22] : memref<8x1xf32, #tpu.memory_space<vmem>>, vector<8x1xf32>
    %55 = arith.addf %54, %50 : vector<8x1xf32>
    %c0_23 = arith.constant 0 : index
    %c0_24 = arith.constant 0 : index
    %56 = vector.load %arg7[%c0_23, %c0_24] : memref<8x1xf32, #tpu.memory_space<vmem>>, vector<8x1xf32>
    tpu.vector_store %arg7[%c0_23, %c0_24], %55 {strides = array<i32>} : memref<8x1xf32, #tpu.memory_space<vmem>>, vector<8x1xf32>,
    %c0_25 = arith.constant 0 : index
    %c0_26 = arith.constant 0 : index
    %57 = vector.load %arg8[%c0_25, %c0_26] : memref<1x1xf32, #tpu.memory_space<vmem>>, vector<1x1xf32>
    %58 = arith.addf %57, %53 : vector<1x1xf32>
    %c0_27 = arith.constant 0 : index
    %c0_28 = arith.constant 0 : index
    %59 = vector.load %arg8[%c0_27, %c0_28] : memref<1x1xf32, #tpu.memory_space<vmem>>, vector<1x1xf32>
    tpu.vector_store %arg8[%c0_27, %c0_28], %58 {strides = array<i32>} : memref<1x1xf32, #tpu.memory_space<vmem>>, vector<1x1xf32>,
    %c1_i32 = arith.constant 1 : i32
    %60 = arith.cmpi eq, %arg1, %c1_i32 : i32
    %61 = arith.extui %60 : i1 to i32
    %c0_i32_29 = arith.constant 0 : i32
    %62 = arith.cmpi ne, %61, %c0_i32_29 : i32
    scf.if %62 {
      %c0_30 = arith.constant 0 : index
      %c0_31 = arith.constant 0 : index
      %c2 = arith.constant 2 : index
      %63 = vector.load %arg4[%c0_30, %c0_31, %c2] : memref<1x8x3xf32, #tpu.memory_space<vmem>>, vector<1x8x1xf32>
      %64 = vector.shape_cast %63 : vector<1x8x1xf32> to vector<8x1xf32>
      %c0_32 = arith.constant 0 : index
      %c0_33 = arith.constant 0 : index
      %65 = vector.load %arg7[%c0_32, %c0_33] : memref<8x1xf32, #tpu.memory_space<vmem>>, vector<8x1xf32>
      %66 = arith.subf %64, %65 : vector<8x1xf32>
      %67 = math.absf %66 : vector<8x1xf32>
      %cst_34 = arith.constant dense<0.000000e+00> : vector<1xf32>
      %68 = vector.multi_reduction <add>, %67, %cst_34 [0] : vector<8x1xf32> to vector<1xf32>
      %69 = vector.shape_cast %68 : vector<1xf32> to vector<1x1xf32>
      %c0_35 = arith.constant 0 : index
      %c0_36 = arith.constant 0 : index
      %70 = vector.load %arg8[%c0_35, %c0_36] : memref<1x1xf32, #tpu.memory_space<vmem>>, vector<1x1xf32>
      %71 = math.absf %70 : vector<1x1xf32>
      %72 = arith.addf %69, %71 : vector<1x1xf32>
      %c0_37 = arith.constant 0 : index
      %c0_38 = arith.constant 0 : index
      %c0_39 = arith.constant 0 : index
      %73 = vector.load %arg6[%c0_37, %c0_38, %c0_39] : memref<1x1x1xf32, #tpu.memory_space<vmem>>, vector<1x1x1xf32>
      %74 = vector.shape_cast %73 : vector<1x1x1xf32> to vector<1x1xf32>
      %75 = vector.shape_cast %72 : vector<1x1xf32> to vector<1x1x1xf32>
      tpu.vector_store %arg6[%c0_37, %c0_38, %c0_39], %75 {strides = array<i32>} : memref<1x1x1xf32, #tpu.memory_space<vmem>>, vector<1x1x1xf32>,
    } else {
    }
    return
  }
  func.func @transform_0(%arg0: i32, %arg1: i32, %arg2: memref<2xf32, #tpu.memory_space<smem>>) -> (i32, i32) {
    %c0_i32 = arith.constant 0 : i32
    %c0_i32_0 = arith.constant 0 : i32
    %c0_i32_1 = arith.constant 0 : i32
    return %c0_i32, %c0_i32_0 : i32, i32
  }
  func.func @transform_1(%arg0: i32, %arg1: i32, %arg2: memref<2xf32, #tpu.memory_space<smem>>) -> (i32, i32, i32) {
    %c0_i32 = arith.constant 0 : i32
    %c0_i32_0 = arith.constant 0 : i32
    %c0_i32_1 = arith.constant 0 : i32
    return %arg0, %c0_i32, %c0_i32_0 : i32, i32, i32
  }
  func.func @transform_2(%arg0: i32, %arg1: i32, %arg2: memref<2xf32, #tpu.memory_space<smem>>) -> (i32, i32, i32, i32) {
    %c0_i32 = arith.constant 0 : i32
    %c0_i32_0 = arith.constant 0 : i32
    %c0_i32_1 = arith.constant 0 : i32
    return %arg0, %arg1, %c0_i32, %c0_i32_0 : i32, i32, i32, i32
  }
  func.func @transform_3(%arg0: i32, %arg1: i32, %arg2: memref<2xf32, #tpu.memory_space<smem>>) -> (i32, i32, i32) {
    %c0_i32 = arith.constant 0 : i32
    %c0_i32_0 = arith.constant 0 : i32
    %c0_i32_1 = arith.constant 0 : i32
    return %arg0, %c0_i32, %c0_i32_0 : i32, i32, i32
  }
}

</mosaic_0001>

<bundles_post_ra>
// kernel: tpu_custom_call.1
= control target key start
LH: loop header
LB: loop body
LE: loop exit
PB: predicated region body
PF: predicated region fallthrough
CT: control target
= control target key end

     0   :  { %s675_s0 = inlined_call_operand.vmem [shape: f32[2], index: 0, kind: input, shape index: {}]   ;;  %s676_s1 = inlined_call_operand.vmem [shape: f32[2,128], index: 1, kind: input, shape index: {}]   ;;  %s677_s2 = inlined_call_operand.vmem [shape: f32[2,8,3], index: 2, kind: input, shape index: {}]   ;;  %s678_s3 = inlined_call_operand.vmem [shape: f32[2,2,1,128], index: 3, kind: input, shape index: {}]   ;;  %s679_s4 = inlined_call_operand.vmem [shape: f32[2,1,1], index: 4, kind: output, shape index: {}]  }
   0x1   :  { %s9_s17 = sshll.u32 %s675_s0, 4  ;;  %s10_s17 = int_to_ptr.vmem [resolvable:$true] %s9_s17 }
   0x2   :  { %s486_s18 = scalar_lea.vmem %s10_s17, 16  ;;  %p491_p1 = scmp.lt.s32.totalorder %s10_s17, %s10_s17 }
   0x3   :  { %p487_p0 = scmp.ne.s32.totalorder %s10_s17, %s486_s18  ;;  %p492_p2 = scmp.lt.s32.totalorder %s486_s18, %s486_s18 }
   0x5   :  { %p493_p3 = por %p492_p2, %p491_p1 }
   0x7   :  { %p494_p4 = pnand %p493_p3, %p487_p0 }
   0x9   :  { %497 = shalt.err (!%p494_p4)  }
   0xa   :  { %s540_s19 = smov [#allocation5]  }
   0xb   :  { %12 = dma.vmem_to_smem %s10_s17, 16, %s540_s19, [#allocation4] }
   0xc   :  { %518 = dma.done.wait [#allocation4], 16 }
   0xd   :  { %519 = vsyncadd [#allocation4], 4294967280 }
   0xe   :  { %14 = sfence }
   0xf   :  { %s574_s20 = smov 0   ;;  %s576_s21 = smov 0  }
  0x10   :  { %s578_s22 = smov 0   ;;  %s580_s0 = smov 0  }
  0x11   :  { %s582_s23 = smov 0  }
  0x12 LB: > { %s29_s24 = sadd.s32 1, %s530_s22  ;;  %s32_s25 = sadd.s32 1, %s534_s0  ;;  %s538_s23 = sphi %s582_s23, %s20_s23   ;;  %s534_s0 = sphi %s580_s0, %s683_s0   ;;  %s530_s22 = sphi %s578_s22, %s682_s22   ;;  %s526_s21 = sphi %s576_s21, %s681_s21   ;;  %s522_s20 = sphi %s574_s20, %s680_s20  }
  0x13   : > { %p30_p5 = scmp.ge.s32.totalorder %s29_s24, 2  ;;  %p421_p6 = scmp.ge.s32.totalorder %s538_s23, 1 }
  0x14   : > { %p169_p7 = scmp.lt.s32.totalorder %s538_s23, 5 }
  0x15   : > { %s685_s24 = smov (%p30_p5, %s29_s24), 0  ;;  %s687_s25 = smov (!%p30_p5, %s32_s25), %s534_s0 }
  0x16   : > { %p170_p8 = pnand %p421_p6, %p169_p7  ;;  %p34_p9 = scmp.ge.s32.totalorder %s687_s25, 2 }
  0x17   : > { %p197_p10 = scmp.lt.s32.totalorder (!%p170_p8), %s526_s21, 1  ;;  %p203_p11 = scmp.lt.s32.totalorder (!%p170_p8), %s522_s20, 1 }
  0x18   : > { %s689_s25 = smov (%p34_p9, %s687_s25), 0  ;;  %173 = sbr.rel (%p170_p8) target bundleno = 671 (0x29f), region = 32 }
  0x19   : > { %p424_p12 = scmp.ne.s32.totalorder (!%p170_p8), %s522_s20, 0 }
  0x1d   : > { %s611_s26 = scalar_select %p197_p10, %s526_s21, 1 }
  0x1e   : > { %s204_s27 = scalar_select %p203_p11, %s522_s20, 1 }
  0x1f   : > { %s422_s28 = sshll.u32 %s611_s26, 3  ;;  %s423_s29 = sshll.u32 %s611_s26, 1 }
  0x20   : > { %s619_s6 = scalar_lea.vmem %s677_s2, %s422_s28  ;;  %s621_s7 = sadd.s32 %s423_s29, %s204_s27 }
  0x21   : > { %s207_s10 = scalar_lea.vmem %s678_s3, %s621_s7  ;;  %s210_s13 = scalar_lea.vmem %s679_s4, %s611_s26 }
  0x22   : > { %214 = sbr.rel (%p424_p12) target bundleno = 42 (0x2a), region = 36 }
  0x27   : > { %vm215_vm0 = vcmask 7168   ;;  %vm217_vm1 = vcmask 0   ;;  %v541_v0 = vmov 0.0  }
  0x28   : > { %216 = vst.msk [vmem:[#allocation2] sm:$0xff] %vm215_vm0, %v541_v0 }
  0x29   : > { %218 = vst.msk [vmem:[#allocation3] sm:$0x1] %vm217_vm1, %v541_v0 }
  0x2a PF: > { %v219_v1 = vld [vmem:[%s619_s6] sm:$0xff]  ;;  %v542_v2 = vmov 0   ;;  %v543_v3 = vmov 1   ;;  %s425_s14 = sshll.u32 %s522_s20, 3  ;;  %v241_v4 = vlaneseq  ;;  %s256_s28 = sld [smem:[#allocation5 + %s526_s21]]  ;;  %vm296_vm4 = vcmask 1040384  }
  0x2b   : > { %476 = vset.pattern.permute.xlu0 %v542_v2  ;;  %s222_s15 = scvt.s32.f32 %s425_s14  ;;  %v224_v6 = vld [vmem:[%s676_s1 + $0x1] sm:$0x1]  ;;  %v426_v11 = vld [vmem:[%s676_s1] ss:$0 sm:$0xff]  ;;  %vm302_vm5 = vcmask 7168   ;;  %vm306_vm6 = vcmask 0  }
  0x2c   : > { %229 = vperm.xlu0 %476, %v219_v1   ;;  %v242_v5 = vshrl.u32 %v241_v4, 7  ;;  %v283_v50 = vld [vmem:[%s207_s10] sm:$0x1]  ;;  %p427_p13 = scmp.ne.s32.totalorder %s522_s20, 1 }
  0x2d   : > { %s223_s16 = smul.f32 0.35355338, %s222_s15  ;;  %s544_s30 = smov (!%p427_p13), 2  }
  0x2e   : > { %v637_v9 = vsub.s32 0, %v242_v5  ;;  %s545_s20 = smov (!%p427_p13), 126  }
  0x2f   : > { %v225_v7 = vstv %s223_s16  ;;  %v300_v57 = vld [vmem:[#allocation2] sm:$0xff] }
  0x30   : > { %477 = vset.pattern.permute.xlu0 %v543_v3  ;;  %v226_v8 = vadd.f32 %v225_v7, %v224_v6  ;;  %v265_v30 = vstv %s256_s28  ;;  %v304_v60 = vld [vmem:[#allocation3] sm:$0x1] }
  0x31   : > { %238 = vperm.xlu0 %477, %v219_v1  }
  0x32   : > { %v244_v12 = vrot.slane %v226_v8, %v637_v9 }
  0xa7   : > { %v230_v10 = vpop.permute.xlu0 %229 }
  0xa8   : > { %v236_v13 = vsub.f32 %v230_v10, %v426_v11 }
  0xaa   : > { %v246_v16 = vmul.f32 %v236_v13, %v236_v13 }
  0xac   : > { %v239_v14 = vpop.permute.xlu0 %238 }
  0xad   : > { %v245_v15 = vsub.f32 %v239_v14, %v244_v12 }
  0xaf   : > { %v247_v17 = vmul.f32 %v245_v15, %v245_v15 }
  0xb1   : > { %v248_v18 = vadd.f32 %v247_v17, %v246_v16 }
  0xb3   : > { %v249_v19 = vrot.slane %v248_v18, 4 }
  0xb5   : > { %v250_v20 = vmin.f32 %v248_v18, %v249_v19 }
  0xb7   : > { %v251_v21 = vrot.slane %v250_v20, 2 }
  0xb9   : > { %v252_v22 = vmin.f32 %v250_v20, %v251_v21 }
  0xbb   : > { %v253_v23 = vrot.slane %v252_v22, 1 }
  0xbd   : > { %v254_v24 = vmin.f32 %v252_v22, %v253_v23 }
  0xbf   : > { %v255_v25 = vmax.f32 %v254_v24, 0.0 }
  0xc1   : > { %478 = vrsqrt.f32 %v255_v25  ;;  %vm259_vm2 = vcmp.eq.f32.partialorder %v255_v25, inf  ;;  %v262_v28 = vand.u32 2147483648, %v255_v25  ;;  %vm261_vm3 = vcmp.eq.f32.partialorder %v255_v25, 0.0 }
  0xce   : > { %v479_v26 = vpop.eup %478 }
  0xcf   : > { %v258_v27 = vmul.f32 %v479_v26, %v255_v25 }
  0xd1   : > { %v260_v29 = vsel %vm259_vm2, %v255_v25, %v258_v27 }
  0xd2   : > { %v263_v31 = vsel %vm261_vm3, %v262_v28, %v260_v29 }
  0xd3   : > { %v264_v32 = vmul.f32 11.313708, %v263_v31 }
  0xd5   : > { %v266_v33 = vsub.f32 %v265_v30, %v264_v32 }
  0xd7   : > { %v267_v34 = vmul.f32 0.088388346, %v266_v33 }
  0xd9   : > { %v268_v35 = vmul.f32 %v267_v34, %v267_v34 }
  0xdb   : > { %v269_v36 = vmin.f32 %v255_v25, %v268_v35 }
  0xdd   : > { %v270_v37 = vsub.f32 %v269_v36, %v248_v18  ;;  %v273_v39 = vsub.f32 %v269_v36, %v268_v35 }
  0xdf   : > { %v271_v38 = vmul.f32 1.442695, %v270_v37  ;;  %v274_v40 = vmul.f32 1.442695, %v273_v39 }
  0xe1   : > { %480 = vpow2.f32 %v271_v38 }
  0xe2   : > { %482 = vpow2.f32 %v274_v40 }
  0xee   : > { %v481_v41 = vpop.eup %480 }
  0xef   : > { %v276_v42 = vrot.slane %v481_v41, 4  ;;  %v483_v48 = vpop.eup %482 }
  0xf1   : > { %v277_v43 = vadd.f32 %v481_v41, %v276_v42 }
  0xf3   : > { %v278_v44 = vrot.slane %v277_v43, 2 }
  0xf5   : > { %v279_v45 = vadd.f32 %v278_v44, %v277_v43 }
  0xf7   : > { %v280_v46 = vrot.slane %v279_v45, 1 }
  0xf9   : > { %v281_v47 = vadd.f32 %v280_v46, %v279_v45 }
  0xfb   : > { %v282_v49 = vadd.f32 %v483_v48, %v281_v47 }
  0xfd   : > { %484 = vrcp.f32 %v282_v49 }
 0x10a   : > { %v485_v51 = vpop.eup %484 }
 0x10b   : > { %v285_v52 = vmul.f32 %v485_v51, %v283_v50 }
 0x10d   : > { %v290_v53 = vrot.slane %v285_v52, %v637_v9  ;;  %v295_v55 = vmul.f32 %v483_v48, %v285_v52 }
 0x10f   : > { %v292_v54 = vmul.f32 %v481_v41, %v290_v53  ;;  %v297_v56 = vsel %vm296_vm4, %v295_v55, 0.0 }
 0x111   : > { %293 = vadd.xlane.f32.xlu1 %v292_v54 }
 0x115   : > { %298 = vadd.xlane.f32.xlu1 %v297_v56 }
 0x19a   : > { %v294_v58 = vpop.xlane.xlu1 %293 }
 0x19b   : > { %v301_v59 = vadd.f32 %v300_v57, %v294_v58 }
 0x19d   : > { %303 = vst.msk [vmem:[#allocation2] sm:$0xff] %vm302_vm5, %v301_v59  ;;  %311 = sbr.rel (%p427_p13) target bundleno = 671 (0x29f), region = 40 }
 0x19e   : > { %v299_v61 = vpop.xlane.xlu1 %298 }
 0x19f   : > { %v305_v62 = vadd.f32 %v304_v60, %v299_v61 }
 0x1a1   : > { %307 = vst.msk [vmem:[#allocation3] sm:$0x1] %vm306_vm6, %v305_v62 }
 0x1a2   : > { %v312_v3 = vld [vmem:[%s619_s6] sm:$0xff]  ;;  %vm320_vm7 = vcmask 23568  }
 0x1a4   : > { %v313_v63 = vld [vmem:[#allocation2] sm:$0xff] }
 0x1a5   : > { %315 = vrot.lane.b32.xlu0 %v313_v63, %s544_s30 }
 0x1a8   : > { %v328_v0 = vld [vmem:[#allocation3] sm:$0x1] }
 0x1a9   : > { %v329_v1 = vand.u32 2147483647, %v328_v0 }
 0x1ab   : > { %v334_v2 = vrot.slane %v329_v1, %v637_v9 }
 0x1ad   : > { %335 = vrot.lane.b32.xlu0 %v334_v2, %s544_s30 }
 0x217   : > { %v316_v4 = vpop.permute.xlu0 %315 }
 0x218   : > { %v318_v5 = vsub.f32 %v312_v3, %v316_v4 }
 0x21a   : > { %v319_v6 = vand.u32 2147483647, %v318_v5 }
 0x21c   : > { %v321_v7 = vsel %vm320_vm7, %v319_v6, 0.0 }
 0x21d   : > { %v322_v8 = vrot.slane %v321_v7, 4 }
 0x21f   : > { %v323_v10 = vadd.f32 %v322_v8, %v321_v7  ;;  %v336_v14 = vpop.permute.xlu0 %335 }
 0x221   : > { %v324_v11 = vrot.slane %v323_v10, 2 }
 0x223   : > { %v325_v12 = vadd.f32 %v324_v11, %v323_v10 }
 0x225   : > { %v326_v13 = vrot.slane %v325_v12, 1 }
 0x227   : > { %v327_v15 = vadd.f32 %v326_v13, %v325_v12 }
 0x229   : > { %v338_v16 = vadd.f32 %v336_v14, %v327_v15 }
 0x22b   : > { %340 = vrot.lane.b32.xlu1 %v338_v16, %s545_s20 }
 0x29d   : > { %v341_v17 = vpop.permute.xlu1 %340 }
 0x29e   : > { %343 = vst.msk [vmem:[%s210_s13] sm:$0x1] %vm306_vm6, %v341_v17 }
 0x29f PF: > { %s20_s23 = sadd.s32 1, %s538_s23   ;;  %s680_s20 = smov %s530_s22 }
 0x2a0   : > { %p17_p0 = scmp.ge.s32.totalorder %s20_s23, 6   ;;  %s681_s21 = smov %s534_s0 }
 0x2a1   : > { %s682_s22 = smov %s685_s24  ;;  %s683_s0 = smov %s689_s25 }
 0x2a2   :  { %19 = sbr.rel (!%p17_p0) target bundleno = 18 (0x12), region = 73 }

</bundles_post_ra>
